<compile_context>
chip_gen: v7x
topology: tpu7x:2x2x1
jax: 0.10.0
libtpu: 0.0.40
codegen_flags: <defaults>
</compile_context>

<pallas_src>
import jax
import jax.numpy as jnp
from jax.experimental import pallas as pl
from jax.experimental.pallas import tpu as pltpu

HIDDEN_SIZE = 12
INPUT_SIZE = 20
OUTPUT_SIZE = 4
DEFAULT_TILE_B = 2048  # 2 bufs * 2048*(20+4)*4B ~= 0.8 MiB of pipelined VMEM


def _round_up(n, m):
    return ((n + m - 1) // m) * m


def _regression_kernel(x_ref, w1_ref, b1_ref, w2_ref, b2_ref, o_ref):
    # layer 1: (tile, 20) @ (20, 12) + (1, 12) -> sigmoid  (f32 MXU accumulate)
    h = jnp.dot(x_ref[...], w1_ref[...], preferred_element_type=jnp.float32)
    h = jax.nn.sigmoid(h + b1_ref[...])          # b1 broadcasts over the batch rows
    # layer 2: (tile, 12) @ (12, 4) + (1, 4) -> sigmoid
    o = jnp.dot(h, w2_ref[...], preferred_element_type=jnp.float32)
    o_ref[...] = jax.nn.sigmoid(o + b2_ref[...]).astype(o_ref.dtype)


def regression_forward(x, w1, b1, w2, b2, *, tile_b=DEFAULT_TILE_B):
    """Pallas TPU forward pass of Regression.

    x  : [B, INPUT_SIZE] float32
    w1 : [INPUT_SIZE, HIDDEN_SIZE], b1 : [1, HIDDEN_SIZE]
    w2 : [HIDDEN_SIZE, OUTPUT_SIZE], b2 : [1, OUTPUT_SIZE]
    returns [B, OUTPUT_SIZE] float32
    """
    B = x.shape[0]
    # Sublane-aligned batch tile; don't over-allocate for tiny batches.
    tile = min(tile_b, _round_up(B, 8))
    padded_B = _round_up(B, tile)
    if padded_B != B:
        x = jnp.pad(x, ((0, padded_B - B), (0, 0)))
    grid = (padded_B // tile,)

    n_weight_bytes = (INPUT_SIZE * HIDDEN_SIZE + HIDDEN_SIZE
                      + HIDDEN_SIZE * OUTPUT_SIZE + OUTPUT_SIZE) * 4
    cost = pl.CostEstimate(
        flops=2 * padded_B * (INPUT_SIZE * HIDDEN_SIZE + HIDDEN_SIZE * OUTPUT_SIZE),
        transcendentals=padded_B * (HIDDEN_SIZE + OUTPUT_SIZE),
        bytes_accessed=padded_B * (INPUT_SIZE + OUTPUT_SIZE) * 4 + n_weight_bytes,
    )

    out = pl.pallas_call(
        _regression_kernel,
        out_shape=jax.ShapeDtypeStruct((padded_B, OUTPUT_SIZE), jnp.float32),
        grid=grid,
        in_specs=[
            # x: tiled over the batch grid (double-buffered by Pallas)
            pl.BlockSpec((tile, INPUT_SIZE), lambda i: (i, 0)),
            # weights/biases: constant index -> resident in VMEM across the grid
            pl.BlockSpec((INPUT_SIZE, HIDDEN_SIZE), lambda i: (0, 0)),
            pl.BlockSpec((1, HIDDEN_SIZE), lambda i: (0, 0)),
            pl.BlockSpec((HIDDEN_SIZE, OUTPUT_SIZE), lambda i: (0, 0)),
            pl.BlockSpec((1, OUTPUT_SIZE), lambda i: (0, 0)),
        ],
        out_specs=pl.BlockSpec((tile, OUTPUT_SIZE), lambda i: (i, 0)),
        compiler_params=pltpu.CompilerParams(
            dimension_semantics=("parallel",),  # megacore sharding on v7x; neutral on v5e/v6e
        ),
        cost_estimate=cost,
    )(x, w1, b1, w2, b2)

    if padded_B != B:
        out = out[:B]
    return out


def init_params(key):
    """Deterministic synthetic parameters (torch.nn.Linear-style uniform init)."""
    k1, k2, k3, k4 = jax.random.split(key, 4)
    bound1 = 1.0 / jnp.sqrt(INPUT_SIZE)
    bound2 = 1.0 / jnp.sqrt(HIDDEN_SIZE)
    w1 = jax.random.uniform(k1, (INPUT_SIZE, HIDDEN_SIZE), jnp.float32, -bound1, bound1)
    b1 = jax.random.uniform(k2, (1, HIDDEN_SIZE), jnp.float32, -bound1, bound1)
    w2 = jax.random.uniform(k3, (HIDDEN_SIZE, OUTPUT_SIZE), jnp.float32, -bound2, bound2)
    b2 = jax.random.uniform(k4, (1, OUTPUT_SIZE), jnp.float32, -bound2, bound2)
    return w1, b1, w2, b2


def _reference(x, w1, b1, w2, b2):
    return jax.nn.sigmoid(jax.nn.sigmoid(x @ w1 + b1) @ w2 + b2)


if __name__ == "__main__":
    key = jax.random.PRNGKey(0)
    k_x, k_x2, k_p = jax.random.split(key, 3)
    w1, b1, w2, b2 = init_params(k_p)

    # Small test (single block, batch padded up to a sublane multiple).
    B = 8
    x = jax.random.normal(k_x, (B, INPUT_SIZE), jnp.float32)
    out = jax.block_until_ready(regression_forward(x, w1, b1, w2, b2))
    ref = _reference(x, w1, b1, w2, b2)
    assert out.shape == (B, OUTPUT_SIZE)
    assert jnp.allclose(out, ref, atol=1e-5, rtol=1e-5)

    # Larger batch exercising the multi-tile grid + tail padding path.
    B2 = 1000
    x2 = jax.random.normal(k_x2, (B2, INPUT_SIZE), jnp.float32)
    out2 = jax.block_until_ready(regression_forward(x2, w1, b1, w2, b2, tile_b=256))
    ref2 = _reference(x2, w1, b1, w2, b2)
    assert out2.shape == (B2, OUTPUT_SIZE)
    assert jnp.allclose(out2, ref2, atol=1e-5, rtol=1e-5)

    print("KERNEL_OK")
</pallas_src>

<mosaic_0001>
module attributes {stable_mosaic.version = 11 : i64} {
  func.func @_regression_kernel(%arg0: i32, %arg1: memref<8x20xf32, #tpu.memory_space<vmem>>, %arg2: memref<20x12xf32, #tpu.memory_space<vmem>>, %arg3: memref<1x12xf32, #tpu.memory_space<vmem>>, %arg4: memref<12x4xf32, #tpu.memory_space<vmem>>, %arg5: memref<1x4xf32, #tpu.memory_space<vmem>>, %arg6: memref<8x4xf32, #tpu.memory_space<vmem>>) attributes {dimension_semantics = [#tpu.dimension_semantics<parallel>], iteration_bounds = array<i64: 1>, scalar_prefetch = 0 : i64, scratch_operands = 0 : i64, tpu.core_type = #tpu.core_type<tc>, window_params = [{transform_indices = @transform_0, window_bounds = array<i64: 8, 20>}, {pipeline_mode = #tpu.pipeline_mode<synchronous>, transform_indices = @transform_1, window_bounds = array<i64: 20, 12>}, {pipeline_mode = #tpu.pipeline_mode<synchronous>, transform_indices = @transform_2, window_bounds = array<i64: 1, 12>}, {pipeline_mode = #tpu.pipeline_mode<synchronous>, transform_indices = @transform_3, window_bounds = array<i64: 12, 4>}, {pipeline_mode = #tpu.pipeline_mode<synchronous>, transform_indices = @transform_4, window_bounds = array<i64: 1, 4>}, {transform_indices = @transform_5, window_bounds = array<i64: 8, 4>}]} {
    %c0 = arith.constant 0 : index
    %c0_0 = arith.constant 0 : index
    %0 = vector.load %arg1[%c0, %c0_0] : memref<8x20xf32, #tpu.memory_space<vmem>>, vector<8x20xf32>
    %c0_1 = arith.constant 0 : index
    %c0_2 = arith.constant 0 : index
    %1 = vector.load %arg2[%c0_1, %c0_2] : memref<20x12xf32, #tpu.memory_space<vmem>>, vector<20x12xf32>
    %cst = arith.constant dense<0.000000e+00> : vector<8x12xf32>
    %2 = tpu.matmul %0, %1, %cst {dimension_numbers = #tpu.dot_dimension_numbers<[1], [0], [0], [1], [0, 0, 1, 1], [], []>} : vector<8x20xf32>, vector<20x12xf32>, vector<8x12xf32> -> vector<8x12xf32>
    %c0_3 = arith.constant 0 : index
    %c0_4 = arith.constant 0 : index
    %3 = vector.load %arg3[%c0_3, %c0_4] : memref<1x12xf32, #tpu.memory_space<vmem>>, vector<1x12xf32>
    %4 = vector.broadcast %3 : vector<1x12xf32> to vector<8x12xf32>
    %5 = arith.addf %2, %4 : vector<8x12xf32>
    %6 = arith.negf %5 : vector<8x12xf32>
    %7 = math.exp %6 : vector<8x12xf32>
    %cst_5 = arith.constant 1.000000e+00 : f32
    %8 = vector.broadcast %cst_5 : f32 to vector<8x12xf32>
    %9 = arith.addf %8, %7 : vector<8x12xf32>
    %10 = arith.divf %8, %9 : vector<8x12xf32>
    %c0_6 = arith.constant 0 : index
    %c0_7 = arith.constant 0 : index
    %11 = vector.load %arg4[%c0_6, %c0_7] : memref<12x4xf32, #tpu.memory_space<vmem>>, vector<12x4xf32>
    %cst_8 = arith.constant dense<0.000000e+00> : vector<8x4xf32>
    %12 = tpu.matmul %10, %11, %cst_8 {dimension_numbers = #tpu.dot_dimension_numbers<[1], [0], [0], [1], [0, 0, 1, 1], [], []>} : vector<8x12xf32>, vector<12x4xf32>, vector<8x4xf32> -> vector<8x4xf32>
    %c0_9 = arith.constant 0 : index
    %c0_10 = arith.constant 0 : index
    %13 = vector.load %arg5[%c0_9, %c0_10] : memref<1x4xf32, #tpu.memory_space<vmem>>, vector<1x4xf32>
    %14 = vector.broadcast %13 : vector<1x4xf32> to vector<8x4xf32>
    %15 = arith.addf %12, %14 : vector<8x4xf32>
    %16 = arith.negf %15 : vector<8x4xf32>
    %17 = math.exp %16 : vector<8x4xf32>
    %cst_11 = arith.constant 1.000000e+00 : f32
    %18 = vector.broadcast %cst_11 : f32 to vector<8x4xf32>
    %19 = arith.addf %18, %17 : vector<8x4xf32>
    %20 = arith.divf %18, %19 : vector<8x4xf32>
    %c0_12 = arith.constant 0 : index
    %c0_13 = arith.constant 0 : index
    %21 = vector.load %arg6[%c0_12, %c0_13] : memref<8x4xf32, #tpu.memory_space<vmem>>, vector<8x4xf32>
    tpu.vector_store %arg6[%c0_12, %c0_13], %20 {strides = array<i32>} : memref<8x4xf32, #tpu.memory_space<vmem>>, vector<8x4xf32>,
    return
  }
  func.func @transform_0(%arg0: i32) -> (i32, i32) {
    %c0_i32 = arith.constant 0 : i32
    %c0_i32_0 = arith.constant 0 : i32
    return %arg0, %c0_i32 : i32, i32
  }
  func.func @transform_1(%arg0: i32) -> (i32, i32) {
    %c0_i32 = arith.constant 0 : i32
    %c0_i32_0 = arith.constant 0 : i32
    %c0_i32_1 = arith.constant 0 : i32
    return %c0_i32, %c0_i32_0 : i32, i32
  }
  func.func @transform_2(%arg0: i32) -> (i32, i32) {
    %c0_i32 = arith.constant 0 : i32
    %c0_i32_0 = arith.constant 0 : i32
    %c0_i32_1 = arith.constant 0 : i32
    return %c0_i32, %c0_i32_0 : i32, i32
  }
  func.func @transform_3(%arg0: i32) -> (i32, i32) {
    %c0_i32 = arith.constant 0 : i32
    %c0_i32_0 = arith.constant 0 : i32
    %c0_i32_1 = arith.constant 0 : i32
    return %c0_i32, %c0_i32_0 : i32, i32
  }
  func.func @transform_4(%arg0: i32) -> (i32, i32) {
    %c0_i32 = arith.constant 0 : i32
    %c0_i32_0 = arith.constant 0 : i32
    %c0_i32_1 = arith.constant 0 : i32
    return %c0_i32, %c0_i32_0 : i32, i32
  }
  func.func @transform_5(%arg0: i32) -> (i32, i32) {
    %c0_i32 = arith.constant 0 : i32
    %c0_i32_0 = arith.constant 0 : i32
    return %arg0, %c0_i32 : i32, i32
  }
}

</mosaic_0001>

<bundles_post_ra>
// kernel: tpu_custom_call.1
= control target key start
LH: loop header
LB: loop body
LE: loop exit
PB: predicated region body
PF: predicated region fallthrough
CT: control target
= control target key end

     0   :  { %v263_v0 = vmov 0.0|0.0   ;;  %vm264_vm0 = vmmov 0   ;;  %v265_v3 = vmov 0.0   ;;  %vm35_vm1 = vcmask 1043456   ;;  %s324_s1 = inlined_call_operand.vmem [shape: f32[20,12], index: 1, kind: input, shape index: {}]   ;;  %s325_s0 = inlined_call_operand.vmem [shape: f32[8,20], index: 0, kind: input, shape index: {}]   ;;  %s326_s3 = inlined_call_operand.vmem [shape: f32[12,4], index: 3, kind: input, shape index: {}]   ;;  %s327_s2 = inlined_call_operand.vmem [shape: f32[1,12], index: 2, kind: input, shape index: {}]   ;;  %s328_s4 = inlined_call_operand.vmem [shape: f32[1,4], index: 4, kind: input, shape index: {}]   ;;  %s329_s5 = inlined_call_operand.vmem [shape: f32[8,4], index: 5, kind: output, shape index: {}]  }
   0x1   :  { %244 = vmatprep.subr.bf16.mxu0 %v263_v0  ;;  %v21_v1 = vld [vmem:[%s324_s1] sm:$0xff]  ;;  %v22_v2 = vld [vmem:[%s324_s1 + $0x8] sm:$0xff]  ;;  %234 = vmatprep.mubr.msk.f32.mxu0 %vm264_vm0, %v265_v3  ;;  %v23_v5 = vld [vmem:[%s324_s1 + $0x10] sm:$0xf]  ;;  %vm31_vm2 = vcmask 162816   ;;  %vm266_vm3 = vmmov 1  }
   0x2   :  { %v245_v4 = vpack.c.bf16 %v22_v2, %v21_v1  ;;  %247 = vmatprep.subr.bf16.mxu1 %v263_v0  ;;  %241 = vmatprep.mubr.msk.f32.mxu1 %vm264_vm0, %v265_v3  ;;  %v20_v6 = vld [vmem:[%s325_s0] sm:$0xff]  ;;  %v116_v8 = vld [vmem:[%s326_s3 + $0x8] sm:$0xf]  ;;  %vm249_vm4 = vmpackc.low %vm35_vm1, %vm266_vm3  ;;  %vm124_vm5 = vcmask 97280   ;;  %vm207_vm6 = vcmask 31744  }
   0x3   :  { %v115_v7 = vld [vmem:[%s326_s3] sm:$0xff] }
   0x4   :  { %246 = vmatpush3.bf16.msra.mxu0 %v245_v4  ;;  %v248_v9 = vpack.c.bf16 %v116_v8, %v115_v7  ;;  %v213_v10 = vld [vmem:[%s327_s2] ss:$0 sm:$0xff] }
   0x5   :  { %232 = vmatprep.subr.mxu0 %v265_v3  ;;  %v217_v18 = vld [vmem:[%s328_s4] ss:$0 sm:$0xff] }
   0x6   :  { %250 = vmatpush3.bf16.msk.msra.mxu1 %vm249_vm4, %v248_v9 }
   0x8   :  { %233 = vmatpush3.msk.msra.mxu0 %vm35_vm1, %v23_v5 }
   0x9   :  { %235 = vmatmul.mubr.msk.f32.vlgmr.msra.gmra.mrb[0].mxu0 %vm31_vm2, %v20_v6 }
  0xdc   :  { %v105_v11 = vpop.f32.mrb[0].mxu0 }
  0xdd   :  { %v106_v12 = vadd.f32 %v213_v10, %v105_v11  ;;  %v236_v13 = vpop.f32.mrb[1].mxu0 }
  0xdf   :  { %v216_v14 = vmul.f32 -1.442695, %v106_v12 }
  0xe1   :  { %255 = vpow2.f32 %v216_v14 }
  0xeb   :  { %v256_v15 = vpop.eup %255 }
  0xec   :  { %v112_v16 = vadd.f32 1.0, %v256_v15 }
  0xee   :  { %257 = vrcp.f32 %v112_v16 }
  0xf8   :  { %v258_v17 = vpop.eup %257 }
  0xf9   :  { %242 = vmatmul.mubr.msk.f32.vlgmr.msra.gmra.mrb[0].mxu1 %vm124_vm5, %v258_v17 }
 0x1cc   :  { %v197_v19 = vpop.f32.mrb[0].mxu1 }
 0x1cd   :  { %v198_v20 = vadd.f32 %v217_v18, %v197_v19  ;;  %v243_v21 = vpop.f32.mrb[1].mxu1 }
 0x1cf   :  { %v220_v22 = vmul.f32 -1.442695, %v198_v20 }
 0x1d1   :  { %259 = vpow2.f32 %v220_v22 }
 0x1db   :  { %v260_v23 = vpop.eup %259 }
 0x1dc   :  { %v204_v24 = vadd.f32 1.0, %v260_v23 }
 0x1de   :  { %261 = vrcp.f32 %v204_v24 }
 0x1e8   :  { %v262_v25 = vpop.eup %261 }
 0x1e9   :  { %208 = vst.msk [vmem:[%s329_s5] sm:$0xff] %vm207_vm6, %v262_v25 }

</bundles_post_ra>
